<compile_context>
chip_gen: v7x
topology: tpu7x:2x2x1
jax: 0.10.0
libtpu: 0.0.40
codegen_flags: <defaults>
</compile_context>

<pallas_src>
import functools
from typing import NamedTuple, Tuple

import jax
import jax.numpy as jnp
from jax.experimental import pallas as pl
from jax.experimental.pallas import tpu as pltpu


def _round_up(x: int, m: int) -> int:
    return ((x + m - 1) // m) * m


class DQNMeta(NamedTuple):
    # per layer: (weight_row_offset, k_pad, bias_row_offset, n_pad)
    layout: Tuple[Tuple[int, int, int, int], ...]
    k0_pad: int       # padded input-feature width fed to the kernel
    in_dim: int       # true input features
    out_dim: int      # true number of actions
    out_width: int    # lane-padded output width written by the kernel


def _mlp_kernel(x_ref, p_ref, o_ref, *, layout):
    """Fused MLP forward for one batch tile.

    x_ref: (TB, k0_pad) f32 activations
    p_ref: (rows, 128)  f32 packed params (all layers' W and b, zero-padded)
    o_ref: (TB, out_width) f32 lane-dense output
    """
    h = x_ref[...].astype(jnp.float32)
    num_layers = len(layout)
    for i, (w_off, k_pad, b_off, n_pad) in enumerate(layout):
        w = p_ref[w_off:w_off + k_pad, :n_pad]   # static VMEM slice, no extra DMA
        b = p_ref[b_off:b_off + 1, :n_pad]       # (1, n_pad) -> broadcasts over TB
        h = jnp.dot(h, w, preferred_element_type=jnp.float32) + b  # MXU + VPU
        if i < num_layers - 1:
            h = jnp.maximum(h, 0.0)              # ReLU; last layer is Identity
    o_ref[...] = h.astype(o_ref.dtype)


def pack_dqn_params(params):
    """Pack [(W_i (in,out), b_i (out,)), ...] into one lane-dense f32 buffer.

    Each weight is zero-padded to (k_pad, 128*) and each bias occupies an
    8-row (sublane aligned) section with the real bias in row 0. Padded lanes
    are exact zeros, so they stay zero through matmul/ReLU and never pollute
    the real outputs.
    (For scaled-up DQNs on v6e/v7x, store the packed weights in bf16 and keep
    f32 accumulation; at this tiny config we keep f32 for exact torch parity.)
    """
    in_dim = params[0][0].shape[0]
    k0_pad = _round_up(in_dim, 8)
    n_pads = [_round_up(w.shape[1], 128) for w, _ in params]
    lane_w = max(n_pads)
    k_pads = [k0_pad] + n_pads[:-1]

    sections = []
    layout = []
    row_off = 0
    for (w, b), k_pad, n_pad in zip(params, k_pads, n_pads):
        k_in, n_out = w.shape
        w_blk = jnp.zeros((k_pad, lane_w), jnp.float32)
        w_blk = w_blk.at[:k_in, :n_out].set(w.astype(jnp.float32))
        b_blk = jnp.zeros((8, lane_w), jnp.float32)
        b_blk = b_blk.at[0, :n_out].set(b.astype(jnp.float32))
        w_off = row_off
        row_off += k_pad
        b_off = row_off
        row_off += 8
        layout.append((w_off, k_pad, b_off, n_pad))
        sections.append(w_blk)
        sections.append(b_blk)

    packed = jnp.concatenate(sections, axis=0)
    meta = DQNMeta(layout=tuple(layout), k0_pad=k0_pad, in_dim=in_dim,
                   out_dim=params[-1][0].shape[1], out_width=n_pads[-1])
    return packed, meta


def dqn_forward(x, packed, meta: DQNMeta, *, block_batch: int = 128):
    """Fused DQN forward. x: (B, in_dim) f32. Returns (B, out_dim) Q-values."""
    B = x.shape[0]
    x = x.astype(jnp.float32)

    # Pad feature dim so it matches the packed layer-0 weight rows.
    if x.shape[1] != meta.k0_pad:
        x = jnp.pad(x, ((0, 0), (0, meta.k0_pad - x.shape[1])))

    # Batch tiling: TB rows per grid step (sublane-aligned), batch padded up.
    tb = min(block_batch, _round_up(B, 8))
    b_pad = _round_up(B, tb)
    if b_pad != B:
        x = jnp.pad(x, ((0, b_pad - B), (0, 0)))

    kernel = functools.partial(_mlp_kernel, layout=meta.layout)
    out = pl.pallas_call(
        kernel,
        out_shape=jax.ShapeDtypeStruct((b_pad, meta.out_width), jnp.float32),
        grid=(b_pad // tb,),
        in_specs=[
            # activations: new tile per grid step (double-buffered by Pallas)
            pl.BlockSpec((tb, meta.k0_pad), lambda i: (i, 0)),
            # packed params: same block every step -> stays VMEM-resident
            pl.BlockSpec(packed.shape, lambda i: (0, 0)),
        ],
        # lane-dense (TB, 128-mult) output -> unmasked vector stores
        out_specs=pl.BlockSpec((tb, meta.out_width), lambda i: (i, 0)),
        compiler_params=pltpu.CompilerParams(
            dimension_semantics=("parallel",)),  # dual-TC sharding on v7x
    )(x, packed)

    return out[:B, :meta.out_dim]


def init_dqn_params(key, fc_size_list):
    """torch.nn.Linear default init: U(-1/sqrt(fan_in), 1/sqrt(fan_in))."""
    params = []
    for i in range(len(fc_size_list) - 1):
        fan_in, fan_out = fc_size_list[i], fc_size_list[i + 1]
        key, kw, kb = jax.random.split(key, 3)
        bound = 1.0 / jnp.sqrt(jnp.float32(fan_in))
        w = jax.random.uniform(kw, (fan_in, fan_out), jnp.float32, -bound, bound)
        b = jax.random.uniform(kb, (fan_out,), jnp.float32, -bound, bound)
        params.append((w, b))
    return params


def reference_forward(x, params):
    """Plain-JAX reference of DQN.forward."""
    h = x
    for i, (w, b) in enumerate(params):
        h = h @ w + b
        if i < len(params) - 1:
            h = jnp.maximum(h, 0.0)
    return h


if __name__ == "__main__":
    # DQN(fc_size_list=[16, 32, 32, 4], activation=nn.ReLU(), ...)
    fc_size_list = [16, 32, 32, 4]

    key = jax.random.PRNGKey(0)
    key, kx = jax.random.split(key)
    params = init_dqn_params(key, fc_size_list)
    packed, meta = pack_dqn_params(params)     # pack once, reuse every call

    # Batched evaluation (replay-buffer / target-net style): amortizes the
    # fixed pallas_call cost and exercises the batch grid + megacore path.
    batch = 256
    x = jax.random.normal(kx, (batch, fc_size_list[0]), dtype=jnp.float32)
    q = jax.block_until_ready(dqn_forward(x, packed, meta))
    q_ref = reference_forward(x, params)
    assert q.shape == (batch, fc_size_list[-1])
    assert jnp.allclose(q, q_ref, atol=1e-5, rtol=1e-5)

    # Tiny action-selection-style batch still works through the same kernel.
    x_small = jax.random.normal(jax.random.PRNGKey(1), (2, fc_size_list[0]),
                                dtype=jnp.float32)
    q_small = jax.block_until_ready(dqn_forward(x_small, packed, meta))
    assert q_small.shape == (2, fc_size_list[-1])
    assert jnp.allclose(q_small, reference_forward(x_small, params),
                        atol=1e-5, rtol=1e-5)

    print("KERNEL_OK")
</pallas_src>

<mosaic_0001>
module attributes {stable_mosaic.version = 11 : i64} {
  func.func @_mlp_kernel(%arg0: i32, %arg1: memref<128x16xf32, #tpu.memory_space<vmem>>, %arg2: memref<296x128xf32, #tpu.memory_space<vmem>>, %arg3: memref<128x128xf32, #tpu.memory_space<vmem>>) attributes {dimension_semantics = [#tpu.dimension_semantics<parallel>], iteration_bounds = array<i64: 2>, scalar_prefetch = 0 : i64, scratch_operands = 0 : i64, tpu.core_type = #tpu.core_type<tc>, window_params = [{transform_indices = @transform_0, window_bounds = array<i64: 128, 16>}, {pipeline_mode = #tpu.pipeline_mode<synchronous>, transform_indices = @transform_1, window_bounds = array<i64: 296, 128>}, {transform_indices = @transform_2, window_bounds = array<i64: 128, 128>}]} {
    %c0 = arith.constant 0 : index
    %c0_0 = arith.constant 0 : index
    %0 = vector.load %arg1[%c0, %c0_0] : memref<128x16xf32, #tpu.memory_space<vmem>>, vector<128x16xf32>
    %c0_1 = arith.constant 0 : index
    %c0_2 = arith.constant 0 : index
    %1 = vector.load %arg2[%c0_1, %c0_2] : memref<296x128xf32, #tpu.memory_space<vmem>>, vector<16x128xf32>
    %c16 = arith.constant 16 : index
    %c0_3 = arith.constant 0 : index
    %2 = vector.load %arg2[%c16, %c0_3] : memref<296x128xf32, #tpu.memory_space<vmem>>, vector<1x128xf32>
    %cst = arith.constant dense<0.000000e+00> : vector<128x128xf32>
    %3 = tpu.matmul %0, %1, %cst {dimension_numbers = #tpu.dot_dimension_numbers<[1], [0], [0], [1], [0, 0, 1, 1], [], []>} : vector<128x16xf32>, vector<16x128xf32>, vector<128x128xf32> -> vector<128x128xf32>
    %4 = vector.broadcast %2 : vector<1x128xf32> to vector<128x128xf32>
    %5 = arith.addf %3, %4 : vector<128x128xf32>
    %cst_4 = arith.constant 0.000000e+00 : f32
    %6 = vector.broadcast %cst_4 : f32 to vector<128x128xf32>
    %7 = arith.maximumf %5, %6 : vector<128x128xf32>
    %c24 = arith.constant 24 : index
    %c0_5 = arith.constant 0 : index
    %8 = vector.load %arg2[%c24, %c0_5] : memref<296x128xf32, #tpu.memory_space<vmem>>, vector<128x128xf32>
    %c152 = arith.constant 152 : index
    %c0_6 = arith.constant 0 : index
    %9 = vector.load %arg2[%c152, %c0_6] : memref<296x128xf32, #tpu.memory_space<vmem>>, vector<1x128xf32>
    %cst_7 = arith.constant dense<0.000000e+00> : vector<128x128xf32>
    %10 = tpu.matmul %7, %8, %cst_7 {dimension_numbers = #tpu.dot_dimension_numbers<[1], [0], [0], [1], [0, 0, 1, 1], [], []>} : vector<128x128xf32>, vector<128x128xf32>, vector<128x128xf32> -> vector<128x128xf32>
    %11 = vector.broadcast %9 : vector<1x128xf32> to vector<128x128xf32>
    %12 = arith.addf %10, %11 : vector<128x128xf32>
    %cst_8 = arith.constant 0.000000e+00 : f32
    %13 = vector.broadcast %cst_8 : f32 to vector<128x128xf32>
    %14 = arith.maximumf %12, %13 : vector<128x128xf32>
    %c160 = arith.constant 160 : index
    %c0_9 = arith.constant 0 : index
    %15 = vector.load %arg2[%c160, %c0_9] : memref<296x128xf32, #tpu.memory_space<vmem>>, vector<128x128xf32>
    %c288 = arith.constant 288 : index
    %c0_10 = arith.constant 0 : index
    %16 = vector.load %arg2[%c288, %c0_10] : memref<296x128xf32, #tpu.memory_space<vmem>>, vector<1x128xf32>
    %cst_11 = arith.constant dense<0.000000e+00> : vector<128x128xf32>
    %17 = tpu.matmul %14, %15, %cst_11 {dimension_numbers = #tpu.dot_dimension_numbers<[1], [0], [0], [1], [0, 0, 1, 1], [], []>} : vector<128x128xf32>, vector<128x128xf32>, vector<128x128xf32> -> vector<128x128xf32>
    %18 = vector.broadcast %16 : vector<1x128xf32> to vector<128x128xf32>
    %19 = arith.addf %17, %18 : vector<128x128xf32>
    %c0_12 = arith.constant 0 : index
    %c0_13 = arith.constant 0 : index
    %20 = vector.load %arg3[%c0_12, %c0_13] : memref<128x128xf32, #tpu.memory_space<vmem>>, vector<128x128xf32>
    tpu.vector_store %arg3[%c0_12, %c0_13], %19 {strides = array<i32>} : memref<128x128xf32, #tpu.memory_space<vmem>>, vector<128x128xf32>,
    return
  }
  func.func @transform_0(%arg0: i32) -> (i32, i32) {
    %c0_i32 = arith.constant 0 : i32
    %c0_i32_0 = arith.constant 0 : i32
    return %arg0, %c0_i32 : i32, i32
  }
  func.func @transform_1(%arg0: i32) -> (i32, i32) {
    %c0_i32 = arith.constant 0 : i32
    %c0_i32_0 = arith.constant 0 : i32
    %c0_i32_1 = arith.constant 0 : i32
    return %c0_i32, %c0_i32_0 : i32, i32
  }
  func.func @transform_2(%arg0: i32) -> (i32, i32) {
    %c0_i32 = arith.constant 0 : i32
    %c0_i32_0 = arith.constant 0 : i32
    return %arg0, %c0_i32 : i32, i32
  }
}

</mosaic_0001>

<bundles_post_ra>
// kernel: tpu_custom_call.1
= control target key start
LH: loop header
LB: loop body
LE: loop exit
PB: predicated region body
PF: predicated region fallthrough
CT: control target
= control target key end

     0   :  { %7 = vsyncpa [#allocation3], 0  ;;  %s1534_s0 = inlined_call_operand.vmem [shape: f32[256,16], index: 0, kind: input, shape index: {}]   ;;  %s1535_s1 = inlined_call_operand.hbm [shape: f32[296,128], index: 1, kind: input, shape index: {}]   ;;  %s1536_s2 = inlined_call_operand.hbm [shape: f32[256,128], index: 2, kind: output, shape index: {}]  }
   0x1   :  { %8 = vsyncpa [#allocation4], 0 }
   0x2   :  { %10 = vsyncpa [#allocation4 + $0x1], 0  ;;  %s1340_s9 = smov 0   ;;  %s1342_s10 = smov 0  }
   0x3   :  { %s1344_s11 = smov 0   ;;  %s1346_s12 = smov 0  }
   0x4 LB: > { %s1361_s13 = sadd.s32 4294967295, %s1317_s12   ;;  %s845_s14 = sadd.s32 4294967294, %s1317_s12   ;;  %s1317_s12 = sphi %s1346_s12, %s1552_s12   ;;  %s1313_s11 = sphi %s1344_s11, %s1551_s11   ;;  %s1309_s10 = sphi %s1342_s10, %s1550_s10   ;;  %s1305_s9 = sphi %s1340_s9, %s1549_s9  }
   0x5   : > { %s1365_s15 = sadd.s32 1, %s1317_s12   ;;  %s70_s16 = sadd.s32 1, %s1313_s11 }
   0x6   : > { %s67_s17 = ssub.s32 %s1317_s12, %s1365_s15  ;;  %p80_p0 = scmp.ne.s32.totalorder %s1313_s11, %s1309_s10 }
   0x7   : > { %p68_p1 = scmp.eq.s32.totalorder %s67_s17, 0  ;;  %p81_p2 = scmp.eq.s32.totalorder %s1361_s13, 1 }
   0x8   : > { %p86_p3 = scmp.ne.s32.totalorder %s1309_s10, %s1305_s9  ;;  %p87_p4 = scmp.eq.s32.totalorder %s845_s14, 1 }
   0x9   : > { %s1376_s18 = scalar_select %p68_p1, %s1313_s11, %s70_s16  }
   0xa   : > { %p1378_p5 = por %p81_p2, %p80_p0  ;;  %p1382_p6 = por %p87_p4, %p86_p3 }
   0xb   : > { %p846_p7 = scmp.ge.s32.totalorder %s1317_s12, 1  ;;  %p94_p8 = scmp.lt.s32.totalorder %s1317_s12, 3 }
   0xc   : > { %s1540_s19 = scalar_select %p1378_p5, 1, 0 }
   0xd   : > { %s1541_s20 = scalar_select %p1382_p6, 1, 0 }
   0xe   : > { %p1537_p9 = scmp.eq.s32.totalorder %s1361_s13, 0  ;;  %p1389_p10 = pnand %p846_p7, %p94_p8 }
   0xf   : > { %s1319_s22 = smov [#allocation2]   ;;  %s1223_s27 = scalar_lea.hbm %s1535_s1, 4736 }
  0x10   : > { %s1542_s21 = scalar_select %p1389_p10, 1, 0 }
  0x11   : > { %s106_s23 = sshll.u32 %s1319_s22, 4  ;;  %p1175_p11 = pneg %p1389_p10  ;;  %s107_s23 = int_to_ptr.vmem [resolvable:$true] %s106_s23 }
  0x12   : > { %p1224_p13 = scmp.ne.s32.totalorder %s1535_s1, %s1223_s27  ;;  %p1230_p3 = scmp.lt.u32.totalorder %s1223_s27, %s1535_s1 }
  0x13   : > { %p1397_p12 = pnand %p1537_p9, %p1175_p11 }
  0x15   : > { %p1225_p0 = pneg %p1397_p12 }
  0x17   : > { %p1226_p1 = pnand %p1225_p0, %p1224_p13 }
  0x19   : > { %p1227_p2 = pneg %p1226_p1 }
  0x1b   : > { %p1232_p4 = pnand %p1230_p3, %p1227_p2 }
  0x1d   : > { %1235 = shalt.err (!%p1232_p4)
}
  0x1e   : > { %s1236_s4 = scalar_lea.vmem %s107_s23, 4736  ;;  %p1244_p9 = scmp.lt.s32.totalorder %s107_s23, %s107_s23 }
  0x1f   : > { %p1237_p7 = scmp.ne.s32.totalorder %s107_s23, %s1236_s4  ;;  %p1245_p6 = scmp.lt.s32.totalorder %s1236_s4, %s1236_s4 }
  0x21   : > { %p1239_p8 = pnand %p1237_p7, %p1225_p0  ;;  %p1246_p5 = por %p1245_p6, %p1244_p9 }
  0x23   : > { %p1240_p11 = pneg %p1239_p8 }
  0x25   : > { %p1247_p10 = pnand %p1246_p5, %p1240_p11 }
  0x27   : > { %1250 = shalt.err (!%p1247_p10)
}
  0x28   : > { %s1320_s5 = smov 128   ;;  %s1321_s6 = smov 8  }
  0x29   : > { %1178 = dma.hbm_to_vmem [thread:$0]  (!%p1397_p12), %s1535_s1, 4736, %s107_s23, [#allocation3], %s1320_s5, %s1320_s5, %s1321_s6  }
  0x2a   : > { %p1544_p13 = scmp.ne.s32.totalorder %s1542_s21, 0 }
  0x2b   : > { %p1545_p1 = scmp.eq.s32.totalorder (!%p1544_p13), %s1361_s13, 0 }
  0x2c   : > { %131 = sbr.rel (%p1544_p13) target bundleno = 754 (0x2f2), region = 28 }
  0x33   : > { %1296 = dma.done.wait (%p1545_p1), [#allocation3], 4736   ;;  %p1546_p0 = pmov %p1545_p1 }
  0x34   : > { %s852_s14 = sshll.u32 %s1361_s13, 4  ;;  %vm183_vm0 = vcmask 130048   ;;  %v176_v0 = vld [vmem:[#allocation2] sm:$0xff]  ;;  %v177_v1 = vld [vmem:[#allocation2 + $0x8] sm:$0xff]  ;;  %v393_v6 = vld [vmem:[#allocation2 + $0x18] sm:$0xff]  ;;  %s150_s21 = sand.u32 1, %s1309_s10  }
  0x35   : > { %1298 = vsyncadd (%p1546_p0), [#allocation3], 4294962560  ;;  %p154_p5 = scmp.lt.s32.totalorder %s852_s14, 31  ;;  %v1101_v3 = vpack.c.bf16 %v177_v1, %v176_v0  ;;  %v394_v7 = vld [vmem:[#allocation2 + $0x20] sm:$0xff]  ;;  %v395_v8 = vld [vmem:[#allocation2 + $0x28] sm:$0xff]  ;;  %s851_s23 = sshll.u32 %s150_s21, 7 }
  0x36   : > { %v1105_v9 = vpack.c.bf16 %v394_v7, %v393_v6  ;;  %v396_v10 = vld [vmem:[#allocation2 + $0x30] sm:$0xff]  ;;  %v397_v13 = vld [vmem:[#allocation2 + $0x38] sm:$0xff]  ;;  %v398_v14 = vld [vmem:[#allocation2 + $0x40] sm:$0xff]  ;;  %s1464_s25 = scalar_lea.vmem [#allocation5], %s851_s23  ;;  %s878_s26 = sshll.u32 %s1361_s13, 11 }
  0x37   : > { %s1554_s14 = smov (!%p154_p5, %s852_s14), 31  ;;  %1102 = vmatprep.subr.bf16.mxu0 %v1101_v3  ;;  %v1109_v12 = vpack.c.bf16 %v396_v10, %v395_v8  ;;  %v1113_v16 = vpack.c.bf16 %v398_v14, %v397_v13  ;;  %v399_v18 = vld [vmem:[#allocation2 + $0x48] sm:$0xff]  ;;  %v400_v19 = vld [vmem:[#allocation2 + $0x50] sm:$0xff]  ;;  %v401_v23 = vld [vmem:[#allocation2 + $0x58] sm:$0xff]  ;;  %s771_s27 = sshll.u32 %s1464_s25, 4  ;;  %s1487_s27 = int_to_ptr.vmem [resolvable:$true] %s771_s27 }
  0x38   : > { %s853_s16 = sshll.u32 %s1554_s14, 3  ;;  %1104 = vmatpush3.bf16.msra.mxu0 %v1101_v3  ;;  %1106 = vmatprep.subr.bf16.mxu1 %v1105_v9  ;;  %v1117_v21 = vpack.c.bf16 %v400_v19, %v399_v18  ;;  %v402_v24 = vld [vmem:[#allocation2 + $0x60] sm:$0xff]  ;;  %v403_v28 = vld [vmem:[#allocation2 + $0x68] sm:$0xff]  ;;  %v404_v29 = vld [vmem:[#allocation2 + $0x70] sm:$0xff]  ;;  %s1485_s30 = scalar_lea.hbm %s1536_s2, %s878_s26 }
  0x39   : > { %s1427_s24 = scalar_lea.vmem %s1534_s0, %s853_s16  ;;  %1108 = vmatpush3.bf16.msra.mxu1 %v1105_v9  ;;  %v1121_v26 = vpack.c.bf16 %v402_v24, %v401_v23  ;;  %v1125_v31 = vpack.c.bf16 %v404_v29, %v403_v28  ;;  %v405_v33 = vld [vmem:[#allocation2 + $0x78] sm:$0xff]  ;;  %v406_v34 = vld [vmem:[#allocation2 + $0x80] sm:$0xff]  ;;  %v407_v40 = vld [vmem:[#allocation2 + $0x88] sm:$0xff]  ;;  %s1493_s13 = scalar_lea.sflag [#allocation4], %s150_s21 }
  0x3a   : > { %v160_v2 = vld [vmem:[%s1427_s24] sm:$0xff]  ;;  %v161_v4 = vld [vmem:[%s1427_s24 + $0x8] sm:$0xff]  ;;  %v162_v5 = vld [vmem:[%s1427_s24 + $0x10] sm:$0xff]  ;;  %1110 = vmatprep.subr.bf16.mxu1 %v1109_v12  ;;  %v1129_v36 = vpack.c.bf16 %v406_v34, %v405_v33  ;;  %s1251_s3 = scalar_lea.vmem %s1487_s27, 2048  ;;  %p1547_p9 = scmp.ne.s32.totalorder %s1540_s19, 0 }
  0x3b   : > { %965 = vmatprep.mubr.msk.f32.mxu0 %vm183_vm0, %v160_v2  ;;  %v163_v11 = vld [vmem:[%s1427_s24 + $0x18] sm:$0xff]  ;;  %v164_v15 = vld [vmem:[%s1427_s24 + $0x20] sm:$0xff]  ;;  %v165_v17 = vld [vmem:[%s1427_s24 + $0x28] sm:$0xff]  ;;  %p1252_p6 = scmp.ne.s32.totalorder %s1487_s27, %s1251_s3  ;;  %s1322_s4 = smov [#allocation5]  }
  0x3c   : > { %966 = vmatmul.mubr.msk.f32.vlgmr.msra.gmra.mrb[0].mxu0 %vm183_vm0, %v161_v4  ;;  %v166_v20 = vld [vmem:[%s1427_s24 + $0x30] sm:$0xff]  ;;  %v167_v22 = vld [vmem:[%s1427_s24 + $0x38] sm:$0xff]  ;;  %v168_v25 = vld [vmem:[%s1427_s24 + $0x40] sm:$0xff]  ;;  %s1255_s5 = sshll.u32 %s1322_s4, 4  ;;  %s1256_s5 = int_to_ptr.vmem [resolvable:$false] %s1255_s5 }
  0x3d   : > { %968 = vmatprep.mubr.msk.f32.mxu0 %vm183_vm0, %v162_v5  ;;  %1112 = vmatpush3.bf16.msra.mxu1 %v1109_v12  ;;  %v169_v27 = vld [vmem:[%s1427_s24 + $0x48] sm:$0xff]  ;;  %v170_v30 = vld [vmem:[%s1427_s24 + $0x50] sm:$0xff]  ;;  %v171_v32 = vld [vmem:[%s1427_s24 + $0x58] sm:$0xff]  ;;  %p1253_p10 = pnand %p1252_p6, %p1547_p9  ;;  %s1257_s6 = scalar_lea.vmem %s1256_s5, 4096 }
  0x3e   : > { %1114 = vmatprep.subr.bf16.mxu1 %v1113_v16  ;;  %v172_v35 = vld [vmem:[%s1427_s24 + $0x60] sm:$0xff]  ;;  %v173_v37 = vld [vmem:[%s1427_s24 + $0x68] sm:$0xff]  ;;  %v174_v38 = vld [vmem:[%s1427_s24 + $0x70] sm:$0xff]  ;;  %p1258_p2 = scmp.lt.s32.totalorder %s1487_s27, %s1256_s5  ;;  %p1259_p3 = scmp.lt.s32.totalorder %s1257_s6, %s1251_s3 }
  0x3f   : > { %v175_v39 = vld [vmem:[%s1427_s24 + $0x78] sm:$0xff]  ;;  %v408_v41 = vld [vmem:[#allocation2 + $0x90] sm:$0xff]  ;;  %v575_v43 = vld [vmem:[#allocation2 + $0xa0] sm:$0xff]  ;;  %p1254_p12 = pneg %p1253_p10 }
  0x40   : > { %969 = vmatmul.mubr.msk.f32.gmra.mrb[2].mxu0 %vm183_vm0, %v163_v11  ;;  %v1133_v42 = vpack.c.bf16 %v408_v41, %v407_v40  ;;  %v576_v44 = vld [vmem:[#allocation2 + $0xa8] sm:$0xff]  ;;  %v577_v45 = vld [vmem:[#allocation2 + $0xb0] sm:$0xff]  ;;  %v578_v47 = vld [vmem:[#allocation2 + $0xb8] sm:$0xff]  ;;  %p1260_p4 = por %p1259_p3, %p1258_p2 }
  0x41   : > { %971 = vmatprep.mubr.msk.f32.mxu0 %vm183_vm0, %v164_v15  ;;  %1116 = vmatpush3.bf16.msra.mxu1 %v1113_v16  ;;  %v1137_v46 = vpack.c.bf16 %v576_v44, %v575_v43  ;;  %v1141_v48 = vpack.c.bf16 %v578_v47, %v577_v45  ;;  %v579_v49 = vld [vmem:[#allocation2 + $0xc0] sm:$0xff]  ;;  %v580_v50 = vld [vmem:[#allocation2 + $0xc8] sm:$0xff]  ;;  %v581_v52 = vld [vmem:[#allocation2 + $0xd0] sm:$0xff] }
  0x42   : > { %1118 = vmatprep.subr.bf16.mxu1 %v1117_v21  ;;  %v1145_v51 = vpack.c.bf16 %v580_v50, %v579_v49  ;;  %v582_v53 = vld [vmem:[#allocation2 + $0xd8] sm:$0xff]  ;;  %v583_v55 = vld [vmem:[#allocation2 + $0xe0] sm:$0xff]  ;;  %v584_v56 = vld [vmem:[#allocation2 + $0xe8] sm:$0xff]  ;;  %p1261_p7 = pnand %p1260_p4, %p1254_p12 }
  0x43   : > { %1138 = vmatprep.subr.bf16.mxu0 %v1137_v46  ;;  %v1149_v54 = vpack.c.bf16 %v582_v53, %v581_v52  ;;  %v1153_v57 = vpack.c.bf16 %v584_v56, %v583_v55  ;;  %v585_v58 = vld [vmem:[#allocation2 + $0xf0] sm:$0xff]  ;;  %v586_v59 = vld [vmem:[#allocation2 + $0xf8] sm:$0xff]  ;;  %v587_v61 = vld [vmem:[#allocation2 + $0x100] sm:$0xff] }
  0x44   : > { %972 = vmatmul.mubr.msk.f32.gmra.mrb[4].mxu0 %vm183_vm0, %v165_v17  ;;  %v1157_v60 = vpack.c.bf16 %v586_v59, %v585_v58  ;;  %v588_v62 = vld [vmem:[#allocation2 + $0x108] sm:$0xff]  ;;  %v854_v0 = vld [vmem:[#allocation2 + $0x10] ss:$0 sm:$0xff]  ;;  %v590_v50 = vld [vmem:[#allocation2 + $0x118] sm:$0xff] }
  0x45   : > { %974 = vmatprep.mubr.msk.f32.mxu0 %vm183_vm0, %v166_v20  ;;  %1120 = vmatpush3.bf16.msra.mxu1 %v1117_v21  ;;  %v1161_v63 = vpack.c.bf16 %v588_v62, %v587_v61  ;;  %v589_v49 = vld [vmem:[#allocation2 + $0x110] sm:$0xff]  ;;  %v871_v52 = vld [vmem:[#allocation2 + $0x98] ss:$0 sm:$0xff] }
  0x46   : > { %1122 = vmatprep.subr.bf16.mxu1 %v1121_v26  ;;  %1140 = vmatpush3.bf16.msra.mxu0 %v1137_v46 }
  0x47   : > { %1142 = vmatprep.subr.bf16.mxu0 %v1141_v48 }
  0x48   : > { %975 = vmatmul.mubr.msk.f32.gmra.mrb[6].mxu0 %vm183_vm0, %v167_v22 }
  0x49   : > { %977 = vmatprep.mubr.msk.f32.mxu0 %vm183_vm0, %v168_v25  ;;  %1124 = vmatpush3.bf16.msra.mxu1 %v1121_v26 }
  0x4a   : > { %1126 = vmatprep.subr.bf16.mxu1 %v1125_v31  ;;  %1144 = vmatpush3.bf16.msra.mxu0 %v1141_v48 }
  0x4b   : > { %1146 = vmatprep.subr.bf16.mxu0 %v1145_v51 }
  0x4c   : > { %978 = vmatmul.mubr.msk.f32.gmra.mrb[8].mxu0 %vm183_vm0, %v169_v27 }
  0x4d   : > { %980 = vmatprep.mubr.msk.f32.mxu0 %vm183_vm0, %v170_v30  ;;  %1128 = vmatpush3.bf16.msra.mxu1 %v1125_v31 }
  0x4e   : > { %1130 = vmatprep.subr.bf16.mxu1 %v1129_v36  ;;  %1148 = vmatpush3.bf16.msra.mxu0 %v1145_v51  ;;  %v1165_v51 = vpack.c.bf16 %v590_v50, %v589_v49 }
  0x4f   : > { %1150 = vmatprep.subr.bf16.mxu0 %v1149_v54 }
  0x50   : > { %981 = vmatmul.mubr.msk.f32.gmra.mrb[10].mxu0 %vm183_vm0, %v171_v32 }
  0x51   : > { %983 = vmatprep.mubr.msk.f32.mxu0 %vm183_vm0, %v172_v35  ;;  %1132 = vmatpush3.bf16.msra.mxu1 %v1129_v36 }
  0x52   : > { %1134 = vmatprep.subr.bf16.mxu1 %v1133_v42  ;;  %1152 = vmatpush3.bf16.msra.mxu0 %v1149_v54 }
  0x53   : > { %1154 = vmatprep.subr.bf16.mxu0 %v1153_v57 }
  0x54   : > { %984 = vmatmul.mubr.msk.f32.gmra.mrb[12].mxu0 %vm183_vm0, %v173_v37 }
  0x55   : > { %986 = vmatprep.mubr.msk.f32.mxu0 %vm183_vm0, %v174_v38  ;;  %1136 = vmatpush3.bf16.msra.mxu1 %v1133_v42 }
  0x56   : > { %1156 = vmatpush3.bf16.msra.mxu0 %v1153_v57 }
  0x57   : > { %1158 = vmatprep.subr.bf16.mxu0 %v1157_v60 }
  0x58   : > { %987 = vmatmul.mubr.msk.f32.gmra.mrb[14].mxu0 %vm183_vm0, %v175_v39 }
  0x5a   : > { %1160 = vmatpush3.bf16.msra.mxu0 %v1157_v60 }
  0x5b   : > { %1162 = vmatprep.subr.bf16.mxu0 %v1161_v63 }
  0x5e   : > { %1164 = vmatpush3.bf16.msra.mxu0 %v1161_v63 }
  0x5f   : > { %1166 = vmatprep.subr.bf16.mxu0 %v1165_v51 }
  0x62   : > { %1168 = vmatpush3.bf16.msra.mxu0 %v1165_v51 }
 0x10f   : > { %v967_v1 = vpop.f32.mrb[0].mxu0 }
 0x110   : > { %v304_v2 = vadd.f32 %v967_v1, %v854_v0  ;;  %v298_v3 = vpop.f32.mrb[1].mxu0 }
 0x111   : > { %v299_v4 = vadd.f32 %v854_v0, %v298_v3 }
 0x112   : > { %v378_v7 = vmax.f32 %v304_v2, 0.0 }
 0x113   : > { %v970_v5 = vpop.f32.mrb[2].mxu0  ;;  %v377_v6 = vmax.f32 %v299_v4, 0.0 }
 0x114   : > { %v314_v8 = vadd.f32 %v970_v5, %v854_v0  ;;  %v308_v9 = vpop.f32.mrb[3].mxu0 }
 0x115   : > { %v309_v10 = vadd.f32 %v854_v0, %v308_v9  ;;  %1021 = vmatprep.mubr.f32.mxu1 %v377_v6 }
 0x116   : > { %1022 = vmatmul.mubr.f32.vlgmr.msra.gmra.mrb[0].mxu1 %v378_v7  ;;  %v380_v13 = vmax.f32 %v314_v8, 0.0 }
 0x117   : > { %v379_v11 = vmax.f32 %v309_v10, 0.0  ;;  %v973_v12 = vpop.f32.mrb[4].mxu0 }
 0x118   : > { %v324_v14 = vadd.f32 %v973_v12, %v854_v0  ;;  %v318_v15 = vpop.f32.mrb[5].mxu0 }
 0x119   : > { %v319_v16 = vadd.f32 %v854_v0, %v318_v15  ;;  %1024 = vmatprep.mubr.f32.mxu1 %v379_v11 }
 0x11a   : > { %1025 = vmatmul.mubr.f32.gmra.mrb[2].mxu1 %v380_v13  ;;  %v382_v19 = vmax.f32 %v324_v14, 0.0 }
 0x11b   : > { %v381_v17 = vmax.f32 %v319_v16, 0.0  ;;  %v976_v18 = vpop.f32.mrb[6].mxu0 }
 0x11c   : > { %v334_v20 = vadd.f32 %v976_v18, %v854_v0  ;;  %v328_v21 = vpop.f32.mrb[7].mxu0 }
 0x11d   : > { %v329_v22 = vadd.f32 %v854_v0, %v328_v21  ;;  %1027 = vmatprep.mubr.f32.mxu1 %v381_v17 }
 0x11e   : > { %1028 = vmatmul.mubr.f32.gmra.mrb[4].mxu1 %v382_v19  ;;  %v384_v25 = vmax.f32 %v334_v20, 0.0 }
 0x11f   : > { %v383_v23 = vmax.f32 %v329_v22, 0.0  ;;  %v979_v24 = vpop.f32.mrb[8].mxu0 }
 0x120   : > { %v344_v26 = vadd.f32 %v979_v24, %v854_v0  ;;  %v338_v27 = vpop.f32.mrb[9].mxu0 }
 0x121   : > { %v339_v28 = vadd.f32 %v854_v0, %v338_v27  ;;  %1030 = vmatprep.mubr.f32.mxu1 %v383_v23 }
 0x122   : > { %1031 = vmatmul.mubr.f32.gmra.mrb[6].mxu1 %v384_v25  ;;  %v386_v31 = vmax.f32 %v344_v26, 0.0 }
 0x123   : > { %v385_v29 = vmax.f32 %v339_v28, 0.0  ;;  %v982_v30 = vpop.f32.mrb[10].mxu0 }
 0x124   : > { %v354_v32 = vadd.f32 %v982_v30, %v854_v0  ;;  %v348_v33 = vpop.f32.mrb[11].mxu0 }
 0x125   : > { %v349_v34 = vadd.f32 %v854_v0, %v348_v33  ;;  %1033 = vmatprep.mubr.f32.mxu1 %v385_v29 }
 0x126   : > { %1034 = vmatmul.mubr.f32.gmra.mrb[8].mxu1 %v386_v31  ;;  %v388_v37 = vmax.f32 %v354_v32, 0.0 }
 0x127   : > { %v387_v35 = vmax.f32 %v349_v34, 0.0  ;;  %v985_v36 = vpop.f32.mrb[12].mxu0 }
 0x128   : > { %v364_v38 = vadd.f32 %v985_v36, %v854_v0  ;;  %v358_v39 = vpop.f32.mrb[13].mxu0 }
 0x129   : > { %v359_v40 = vadd.f32 %v854_v0, %v358_v39  ;;  %1036 = vmatprep.mubr.f32.mxu1 %v387_v35 }
 0x12a   : > { %1037 = vmatmul.mubr.f32.gmra.mrb[10].mxu1 %v388_v37  ;;  %v390_v43 = vmax.f32 %v364_v38, 0.0  ;;  %v872_v37 = vld [vmem:[#allocation2 + $0x120] ss:$0 sm:$0xff] }
 0x12b   : > { %v389_v41 = vmax.f32 %v359_v40, 0.0  ;;  %v988_v42 = vpop.f32.mrb[14].mxu0 }
 0x12c   : > { %v374_v44 = vadd.f32 %v988_v42, %v854_v0  ;;  %v368_v45 = vpop.f32.mrb[15].mxu0 }
 0x12d   : > { %v369_v46 = vadd.f32 %v854_v0, %v368_v45  ;;  %1039 = vmatprep.mubr.f32.mxu1 %v389_v41 }
 0x12e   : > { %1040 = vmatmul.mubr.f32.gmra.mrb[12].mxu1 %v390_v43  ;;  %v392_v48 = vmax.f32 %v374_v44, 0.0 }
 0x12f   : > { %v391_v47 = vmax.f32 %v369_v46, 0.0 }
 0x131   : > { %1042 = vmatprep.mubr.f32.mxu1 %v391_v47 }
 0x132   : > { %1043 = vmatmul.mubr.f32.gmra.mrb[14].mxu1 %v392_v48 }
 0x1e9   : > { %v1023_v53 = vpop.f32.mrb[0].mxu1 }
 0x1ea   : > { %v486_v54 = vadd.f32 %v1023_v53, %v871_v52  ;;  %v480_v55 = vpop.f32.mrb[1].mxu1 }
 0x1eb   : > { %v481_v56 = vadd.f32 %v871_v52, %v480_v55 }
 0x1ec   : > { %v560_v59 = vmax.f32 %v486_v54, 0.0 }
 0x1ed   : > { %v559_v57 = vmax.f32 %v481_v56, 0.0  ;;  %v1026_v58 = vpop.f32.mrb[2].mxu1 }
 0x1ee   : > { %v496_v60 = vadd.f32 %v1026_v58, %v871_v52  ;;  %v490_v61 = vpop.f32.mrb[3].mxu1 }
 0x1ef   : > { %v491_v62 = vadd.f32 %v871_v52, %v490_v61  ;;  %1077 = vmatprep.mubr.f32.mxu0 %v559_v57 }
 0x1f0   : > { %1078 = vmatmul.mubr.f32.vlgmr.msra.gmra.mrb[16].mxu0 %v560_v59  ;;  %v562_v1 = vmax.f32 %v496_v60, 0.0 }
 0x1f1   : > { %v561_v63 = vmax.f32 %v491_v62, 0.0  ;;  %v1029_v0 = vpop.f32.mrb[4].mxu1 }
 0x1f2   : > { %v506_v2 = vadd.f32 %v1029_v0, %v871_v52  ;;  %v500_v3 = vpop.f32.mrb[5].mxu1 }
 0x1f3   : > { %v501_v4 = vadd.f32 %v871_v52, %v500_v3  ;;  %1080 = vmatprep.mubr.f32.mxu0 %v561_v63 }
 0x1f4   : > { %1081 = vmatmul.mubr.f32.gmra.mrb[18].mxu0 %v562_v1  ;;  %v564_v7 = vmax.f32 %v506_v2, 0.0 }
 0x1f5   : > { %v563_v5 = vmax.f32 %v501_v4, 0.0  ;;  %v1032_v6 = vpop.f32.mrb[6].mxu1 }
 0x1f6   : > { %v516_v8 = vadd.f32 %v1032_v6, %v871_v52  ;;  %v510_v9 = vpop.f32.mrb[7].mxu1 }
 0x1f7   : > { %v511_v10 = vadd.f32 %v871_v52, %v510_v9  ;;  %1083 = vmatprep.mubr.f32.mxu0 %v563_v5 }
 0x1f8   : > { %1084 = vmatmul.mubr.f32.gmra.mrb[20].mxu0 %v564_v7  ;;  %v566_v13 = vmax.f32 %v516_v8, 0.0 }
 0x1f9   : > { %v565_v11 = vmax.f32 %v511_v10, 0.0  ;;  %v1035_v12 = vpop.f32.mrb[8].mxu1 }
 0x1fa   : > { %v526_v14 = vadd.f32 %v1035_v12, %v871_v52  ;;  %v520_v15 = vpop.f32.mrb[9].mxu1 }
 0x1fb   : > { %v521_v16 = vadd.f32 %v871_v52, %v520_v15  ;;  %1086 = vmatprep.mubr.f32.mxu0 %v565_v11 }
 0x1fc   : > { %1087 = vmatmul.mubr.f32.gmra.mrb[22].mxu0 %v566_v13  ;;  %v568_v19 = vmax.f32 %v526_v14, 0.0 }
 0x1fd   : > { %v567_v17 = vmax.f32 %v521_v16, 0.0  ;;  %v1038_v18 = vpop.f32.mrb[10].mxu1 }
 0x1fe   : > { %v536_v20 = vadd.f32 %v1038_v18, %v871_v52  ;;  %v530_v21 = vpop.f32.mrb[11].mxu1 }
 0x1ff   : > { %v531_v22 = vadd.f32 %v871_v52, %v530_v21  ;;  %1089 = vmatprep.mubr.f32.mxu0 %v567_v17 }
 0x200   : > { %1090 = vmatmul.mubr.f32.gmra.mrb[24].mxu0 %v568_v19  ;;  %v570_v25 = vmax.f32 %v536_v20, 0.0 }
 0x201   : > { %v569_v23 = vmax.f32 %v531_v22, 0.0  ;;  %v1041_v24 = vpop.f32.mrb[12].mxu1 }
 0x202   : > { %v546_v26 = vadd.f32 %v1041_v24, %v871_v52  ;;  %v540_v27 = vpop.f32.mrb[13].mxu1 }
 0x203   : > { %v541_v28 = vadd.f32 %v871_v52, %v540_v27  ;;  %1092 = vmatprep.mubr.f32.mxu0 %v569_v23 }
 0x204   : > { %1093 = vmatmul.mubr.f32.gmra.mrb[26].mxu0 %v570_v25  ;;  %v572_v31 = vmax.f32 %v546_v26, 0.0 }
 0x205   : > { %v571_v29 = vmax.f32 %v541_v28, 0.0  ;;  %v1044_v30 = vpop.f32.mrb[14].mxu1 }
 0x206   : > { %v556_v32 = vadd.f32 %v1044_v30, %v871_v52  ;;  %v550_v33 = vpop.f32.mrb[15].mxu1 }
 0x207   : > { %v551_v34 = vadd.f32 %v871_v52, %v550_v33  ;;  %1095 = vmatprep.mubr.f32.mxu0 %v571_v29 }
 0x208   : > { %1096 = vmatmul.mubr.f32.gmra.mrb[28].mxu0 %v572_v31  ;;  %v574_v36 = vmax.f32 %v556_v32, 0.0 }
 0x209   : > { %v573_v35 = vmax.f32 %v551_v34, 0.0 }
 0x20b   : > { %1098 = vmatprep.mubr.f32.mxu0 %v573_v35 }
 0x20c   : > { %1099 = vmatmul.mubr.f32.gmra.mrb[30].mxu0 %v574_v36 }
 0x2c3   : > { %v1079_v38 = vpop.f32.mrb[16].mxu0 }
 0x2c4   : > { %v668_v39 = vadd.f32 %v1079_v38, %v872_v37  ;;  %v662_v40 = vpop.f32.mrb[17].mxu0 }
 0x2c5   : > { %v663_v41 = vadd.f32 %v872_v37, %v662_v40 }
 0x2c6   : > { %742 = vst [vmem:[%s1464_s25 + $0x8] sm:$0xff] %v668_v39 }
 0x2c7   : > { %741 = vst [vmem:[%s1464_s25] sm:$0xff] %v663_v41  ;;  %v1082_v42 = vpop.f32.mrb[18].mxu0 }
 0x2c8   : > { %v678_v43 = vadd.f32 %v1082_v42, %v872_v37  ;;  %v672_v44 = vpop.f32.mrb[19].mxu0 }
 0x2c9   : > { %v673_v45 = vadd.f32 %v872_v37, %v672_v44 }
 0x2ca   : > { %744 = vst [vmem:[%s1464_s25 + $0x18] sm:$0xff] %v678_v43 }
 0x2cb   : > { %743 = vst [vmem:[%s1464_s25 + $0x10] sm:$0xff] %v673_v45  ;;  %v1085_v46 = vpop.f32.mrb[20].mxu0 }
 0x2cc   : > { %v688_v47 = vadd.f32 %v1085_v46, %v872_v37  ;;  %v682_v48 = vpop.f32.mrb[21].mxu0 }
 0x2cd   : > { %v683_v49 = vadd.f32 %v872_v37, %v682_v48 }
 0x2ce   : > { %746 = vst [vmem:[%s1464_s25 + $0x28] sm:$0xff] %v688_v47 }
 0x2cf   : > { %745 = vst [vmem:[%s1464_s25 + $0x20] sm:$0xff] %v683_v49  ;;  %v1088_v50 = vpop.f32.mrb[22].mxu0 }
 0x2d0   : > { %v698_v51 = vadd.f32 %v1088_v50, %v872_v37  ;;  %v692_v52 = vpop.f32.mrb[23].mxu0 }
 0x2d1   : > { %v693_v53 = vadd.f32 %v872_v37, %v692_v52 }
 0x2d2   : > { %748 = vst [vmem:[%s1464_s25 + $0x38] sm:$0xff] %v698_v51 }
 0x2d3   : > { %747 = vst [vmem:[%s1464_s25 + $0x30] sm:$0xff] %v693_v53  ;;  %v1091_v54 = vpop.f32.mrb[24].mxu0 }
 0x2d4   : > { %v708_v55 = vadd.f32 %v1091_v54, %v872_v37  ;;  %v702_v56 = vpop.f32.mrb[25].mxu0 }
 0x2d5   : > { %v703_v57 = vadd.f32 %v872_v37, %v702_v56 }
 0x2d6   : > { %750 = vst [vmem:[%s1464_s25 + $0x48] sm:$0xff] %v708_v55 }
 0x2d7   : > { %749 = vst [vmem:[%s1464_s25 + $0x40] sm:$0xff] %v703_v57  ;;  %v1094_v58 = vpop.f32.mrb[26].mxu0 }
 0x2d8   : > { %v718_v59 = vadd.f32 %v1094_v58, %v872_v37  ;;  %v712_v60 = vpop.f32.mrb[27].mxu0 }
 0x2d9   : > { %v713_v61 = vadd.f32 %v872_v37, %v712_v60 }
 0x2da   : > { %752 = vst [vmem:[%s1464_s25 + $0x58] sm:$0xff] %v718_v59 }
 0x2db   : > { %751 = vst [vmem:[%s1464_s25 + $0x50] sm:$0xff] %v713_v61  ;;  %v1097_v62 = vpop.f32.mrb[28].mxu0 }
 0x2dc   : > { %v728_v63 = vadd.f32 %v1097_v62, %v872_v37  ;;  %v722_v0 = vpop.f32.mrb[29].mxu0 }
 0x2dd   : > { %v723_v1 = vadd.f32 %v872_v37, %v722_v0 }
 0x2de   : > { %754 = vst [vmem:[%s1464_s25 + $0x68] sm:$0xff] %v728_v63 }
 0x2df   : > { %753 = vst [vmem:[%s1464_s25 + $0x60] sm:$0xff] %v723_v1  ;;  %v1100_v2 = vpop.f32.mrb[30].mxu0 }
 0x2e0   : > { %v738_v3 = vadd.f32 %v1100_v2, %v872_v37  ;;  %v732_v4 = vpop.f32.mrb[31].mxu0 }
 0x2e1   : > { %v733_v5 = vadd.f32 %v872_v37, %v732_v4 }
 0x2e2   : > { %756 = vst [vmem:[%s1464_s25 + $0x78] sm:$0xff] %v738_v3 }
 0x2e3   : > { %755 = vst [vmem:[%s1464_s25 + $0x70] sm:$0xff] %v733_v5 }
 0x2e4   : > { %1264 = shalt.err (!%p1261_p7)
}
 0x2e5   : > { %s1265_s7 = scalar_lea.hbm %s1485_s30, 2048  ;;  %s1269_s16 = scalar_lea.hbm %s1536_s2, 4096 }
 0x2e6   : > { %p1266_p8 = scmp.ne.s32.totalorder %s1485_s30, %s1265_s7  ;;  %p1270_p1 = scmp.lt.u32.totalorder %s1485_s30, %s1536_s2 }
 0x2e7   : > { %p1271_p0 = scmp.lt.u32.totalorder %s1269_s16, %s1265_s7  ;;  %p1273_p6 = scmp.lt.u32.totalorder %s1265_s7, %s1485_s30 }
 0x2e8   : > { %p1267_p11 = pnand %p1266_p8, %p1547_p9 }
 0x2e9   : > { %p1272_p5 = por %p1271_p0, %p1270_p1 }
 0x2ea   : > { %p1268_p13 = pneg %p1267_p11 }
 0x2eb   : > { %p1274_p10 = por %p1273_p6, %p1272_p5 }
 0x2ed   : > { %p1275_p12 = pnand %p1274_p10, %p1268_p13 }
 0x2ef   : > { %1278 = shalt.err (!%p1275_p12)
}
 0x2f0   : > { %s1323_s24 = smov 128   ;;  %s1324_s21 = smov 8  }
 0x2f1   : > { %1173 = dma.vmem_to_hbm [thread:$0]  (%p1547_p9), %s1487_s27, 2048, %s1485_s30, %s1493_s13, %s1323_s24, %s1323_s24, %s1324_s21  }
 0x2f2 PF: > { %p1185_p2 = scmp.ge.s32.totalorder %s1317_s12, 2  ;;  %s786_s23 = sand.u32 1, %s1305_s9  }
 0x2f3   : > { %p1548_p3 = scmp.ne.s32.totalorder %s1541_s20, 0  ;;  %s787_s25 = scalar_lea.sflag [#allocation4], %s786_s23 }
 0x2f5   : > { %p1180_p4 = pnand %p1185_p2, %p1548_p3 }
 0x2f7   : > { %1300 = dma.done.wait (!%p1180_p4), %s787_s25, 2048  }
 0x2f8   : > { %1302 = vsyncadd (!%p1180_p4), %s787_s25, 4294965248  ;;  %p13_p7 = scmp.ge.s32.totalorder %s1365_s15, 4   ;;  %s1549_s9 = smov %s1309_s10 }
 0x2f9   : > { %s1550_s10 = smov %s1313_s11  ;;  %s1551_s11 = smov %s1376_s18 }
 0x2fa   : > { %s1552_s12 = smov %s1365_s15  ;;  %15 = sbr.rel (!%p13_p7) target bundleno = 4 (0x4), region = 68 }
 0x301   :  { %792 = vsyncpa [#allocation3], 1 }
 0x302   :  { %794 = vsyncpa [#allocation3 + $0x1], 1 }
 0x303   :  { %795 = vsyncpa [#allocation4], 1 }
 0x304   :  { %797 = vsyncpa [#allocation4 + $0x1], 1 }

</bundles_post_ra>
